<compile_context>
chip_gen: v7x
topology: tpu7x:2x2x1
jax: 0.10.0
libtpu: 0.0.40
codegen_flags: <defaults>
</compile_context>

<pallas_src>
import jax
import jax.numpy as jnp
from jax.experimental import pallas as pl
from jax.experimental.pallas import tpu as pltpu


def soft_q_kernel(obs_ref, act_ref, w1_ref, b1_ref, w2_ref, b2_ref,
                  w3p_ref, b3_ref, o_ref, x_ref):
    obs_dim = obs_ref.shape[-1]

    # torch.cat([obs, action], dim=-1): lane-concat into a tiny VMEM scratch
    # (static-sliced masked stores; negligible vs. the matmuls).  This makes
    # layer 1 ONE MXU pass over K=16 instead of two padded-K passes.
    x_ref[:, :obs_dim] = obs_ref[...]
    x_ref[:, obs_dim:] = act_ref[...]

    # Layer 1: Linear(obs_dim + act_dim -> H1) + ReLU.  bf16 MXU, f32 acc.
    h1 = jnp.dot(x_ref[...].astype(jnp.bfloat16), w1_ref[...],
                 preferred_element_type=jnp.float32)
    h1 = jnp.maximum(h1 + b1_ref[...], 0.0).astype(jnp.bfloat16)

    # Layer 2: Linear(H1 -> H2) + ReLU.
    h2 = jnp.dot(h1, w2_ref[...], preferred_element_type=jnp.float32)
    h2 = jnp.maximum(h2 + b2_ref[...], 0.0).astype(jnp.bfloat16)

    # Layer 3: Linear(H2 -> 1) on the MXU via w3 zero-padded to (H2, 128);
    # q lives in column 0.  Keeps the saturated VPU/XLU slots free.
    q = jnp.dot(h2, w3p_ref[...], preferred_element_type=jnp.float32)
    o_ref[...] = (q[:, 0:1] + b3_ref[0]).astype(o_ref.dtype)


def _pick_tile_b(B, cap=2048):
    """Largest divisor-of-B tile (multiple of 128, <= cap), preferring >= 2
    grid steps so v7x's two TensorCores both get work."""
    if B < 256 or B % 128 != 0:
        return B                       # single step; too small to split
    m = B // 128
    best = None
    for d in range(m, 0, -1):
        if m % d:
            continue
        t = 128 * d
        if t > cap:
            continue
        if best is None:
            best = t                   # largest tile that fits the cap
        if m // d >= 2:
            return t                   # first cap-fitting tile with >=2 steps
    return best if best is not None else B


def prepare_params(params):
    """One-time conversion of (W, b) params into the kernel-ready layout.
    Weights are (in_features, out_features); matmul weights are bf16."""
    w1, b1, w2, b2, w3, b3 = params
    H1 = w1.shape[1]
    H2 = w2.shape[1]
    w1_bf = jnp.asarray(w1, jnp.bfloat16)                       # (D, H1)
    b1_f = jnp.asarray(b1, jnp.float32).reshape(1, H1)
    w2_bf = jnp.asarray(w2, jnp.bfloat16)                       # (H1, H2)
    b2_f = jnp.asarray(b2, jnp.float32).reshape(1, H2)
    w3_col = jnp.asarray(w3, jnp.float32).reshape(H2, 1)
    w3_pad = jnp.pad(w3_col, ((0, 0), (0, 127))).astype(jnp.bfloat16)  # (H2,128)
    b3_s = jnp.asarray(b3, jnp.float32).reshape(1)              # SMEM scalar
    return (w1_bf, b1_f, w2_bf, b2_f, w3_pad, b3_s)


def soft_q_forward(obs, action, prepped, *, tile_b=None):
    """Q(s, a) -> (B, 1).  obs: (B, obs_dim), action: (B, act_dim), f32."""
    w1_bf, b1_f, w2_bf, b2_f, w3_pad, b3_s = prepped
    B, obs_dim = obs.shape
    Ba, act_dim = action.shape
    assert B == Ba, "obs / action batch mismatch"
    D = obs_dim + act_dim
    H1 = w1_bf.shape[1]
    H2 = w2_bf.shape[1]
    assert w1_bf.shape[0] == D, "W1 must be ((obs_dim+act_dim), H1)"

    if tile_b is None:
        tile_b = _pick_tile_b(B)
    tile_b = min(tile_b, B)
    assert B % tile_b == 0, "batch must be a multiple of tile_b"
    assert tile_b == B or tile_b % 128 == 0, \
        "tile_b must be a multiple of 128 (or the whole batch)"

    grid = (B // tile_b,)
    resident = lambda shape: pl.BlockSpec(shape, lambda i: tuple(0 for _ in shape))

    flops = 2 * B * (D * H1 + H1 * H2 + H2 * 128)
    bytes_accessed = (
        obs.size * 4 + action.size * 4 + B * 4                   # acts in/out
        + (w1_bf.size + w2_bf.size + w3_pad.size) * 2            # bf16 weights
        + (H1 + H2 + 1) * 4)                                     # biases (f32)

    out = pl.pallas_call(
        soft_q_kernel,
        out_shape=jax.ShapeDtypeStruct((B, 1), jnp.float32),
        grid_spec=pltpu.PrefetchScalarGridSpec(
            num_scalar_prefetch=0,
            grid=grid,
            in_specs=[
                pl.BlockSpec((tile_b, obs_dim), lambda i: (i, 0)),   # obs tile
                pl.BlockSpec((tile_b, act_dim), lambda i: (i, 0)),   # act tile
                resident((D, H1)),                                   # W1 (bf16)
                resident((1, H1)),                                   # b1
                resident((H1, H2)),                                  # W2 (bf16)
                resident((1, H2)),                                   # b2
                resident((H2, 128)),                                 # W3 padded
                pl.BlockSpec(memory_space=pltpu.MemorySpace.SMEM),   # b3 scalar
            ],
            out_specs=pl.BlockSpec((tile_b, 1), lambda i: (i, 0)),
            scratch_shapes=[pltpu.VMEM((tile_b, D), jnp.float32)],   # obs|act
        ),
        compiler_params=pltpu.CompilerParams(
            dimension_semantics=("parallel",),
            vmem_limit_bytes=32 * 1024 * 1024),
        cost_estimate=pl.CostEstimate(
            flops=flops, transcendentals=0, bytes_accessed=bytes_accessed),
    )(obs, action, w1_bf, b1_f, w2_bf, b2_f, w3_pad, b3_s)

    return out


def init_params(key, obs_dim, act_dim, hidden_dims=(256, 256)):
    """Deterministic init mimicking nn.Linear default (U[-1/sqrt(fan_in), +])."""
    dims = [obs_dim + act_dim, *hidden_dims, 1]
    params = []
    for i in range(len(dims) - 1):
        fan_in, fan_out = dims[i], dims[i + 1]
        key, kw, kb = jax.random.split(key, 3)
        bound = 1.0 / jnp.sqrt(jnp.float32(fan_in))
        # stored as (in, out): kernel computes x @ W
        w = jax.random.uniform(kw, (fan_in, fan_out), jnp.float32, -bound, bound)
        b = jax.random.uniform(kb, (1, fan_out), jnp.float32, -bound, bound)
        params.extend([w, b])
    return tuple(params)


def soft_q_reference(obs, action, params):
    """Pure-JAX f32 reference for correctness check (matches the torch module)."""
    w1, b1, w2, b2, w3, b3 = params
    x = jnp.concatenate([obs, action], axis=-1)
    h1 = jnp.maximum(x @ w1 + b1, 0.0)
    h2 = jnp.maximum(h1 @ w2 + b2, 0.0)
    return h2 @ w3 + b3


if __name__ == "__main__":
    OBS_DIM, ACT_DIM = 12, 4
    key = jax.random.PRNGKey(0)
    k_par, k1, k2, k3, k4 = jax.random.split(key, 5)

    params = init_params(k_par, OBS_DIM, ACT_DIM, hidden_dims=(256, 256))
    prepped = prepare_params(params)      # one-time weight prep (bf16 / padded)

    q_fn = jax.jit(lambda o, a: soft_q_forward(o, a, prepped))

    # Small single-tile case.
    B = 8
    obs = jax.random.normal(k1, (B, OBS_DIM), jnp.float32)
    act = jax.random.normal(k2, (B, ACT_DIM), jnp.float32)
    q = q_fn(obs, act)
    jax.block_until_ready(q)
    q_ref = soft_q_reference(obs, act, params)
    assert q.shape == (B, 1)
    # bf16 matmul weights with f32 accumulation: tolerance loosened vs f32 ref.
    assert jnp.allclose(q, q_ref, atol=5e-2, rtol=5e-2), "mismatch vs reference (B=8)"

    # Multi-tile case: exercises the grid (>= 2 steps -> both v7x TensorCores).
    B = 512
    obs = jax.random.normal(k3, (B, OBS_DIM), jnp.float32)
    act = jax.random.normal(k4, (B, ACT_DIM), jnp.float32)
    q = q_fn(obs, act)
    jax.block_until_ready(q)
    q_ref = soft_q_reference(obs, act, params)
    assert q.shape == (B, 1)
    assert jnp.allclose(q, q_ref, atol=5e-2, rtol=5e-2), "mismatch vs reference (B=512)"

    print("KERNEL_OK")
</pallas_src>

<mosaic_0001>
module attributes {stable_mosaic.version = 11 : i64} {
  func.func @soft_q_kernel(%arg0: i32, %arg1: memref<8x12xf32, #tpu.memory_space<vmem>>, %arg2: memref<8x4xf32, #tpu.memory_space<vmem>>, %arg3: memref<16x256xbf16, #tpu.memory_space<vmem>>, %arg4: memref<1x256xf32, #tpu.memory_space<vmem>>, %arg5: memref<256x256xbf16, #tpu.memory_space<vmem>>, %arg6: memref<1x256xf32, #tpu.memory_space<vmem>>, %arg7: memref<256x128xbf16, #tpu.memory_space<vmem>>, %arg8: memref<1xf32, #tpu.memory_space<smem>>, %arg9: memref<8x1xf32, #tpu.memory_space<vmem>>, %arg10: memref<8x16xf32, #tpu.memory_space<vmem>>) attributes {dimension_semantics = [#tpu.dimension_semantics<parallel>], iteration_bounds = array<i64: 1>, scalar_prefetch = 0 : i64, scratch_operands = 1 : i64, tpu.core_type = #tpu.core_type<tc>, window_params = [{transform_indices = @transform_0, window_bounds = array<i64: 8, 12>}, {transform_indices = @transform_1, window_bounds = array<i64: 8, 4>}, {pipeline_mode = #tpu.pipeline_mode<synchronous>, transform_indices = @transform_2, window_bounds = array<i64: 16, 256>}, {pipeline_mode = #tpu.pipeline_mode<synchronous>, transform_indices = @transform_3, window_bounds = array<i64: 1, 256>}, {pipeline_mode = #tpu.pipeline_mode<synchronous>, transform_indices = @transform_4, window_bounds = array<i64: 256, 256>}, {pipeline_mode = #tpu.pipeline_mode<synchronous>, transform_indices = @transform_5, window_bounds = array<i64: 1, 256>}, {pipeline_mode = #tpu.pipeline_mode<synchronous>, transform_indices = @transform_6, window_bounds = array<i64: 256, 128>}, {transform_indices = @transform_7, window_bounds = array<i64: 1>}, {transform_indices = @transform_8, window_bounds = array<i64: 8, 1>}]} {
    %c0 = arith.constant 0 : index
    %c0_0 = arith.constant 0 : index
    %0 = vector.load %arg1[%c0, %c0_0] : memref<8x12xf32, #tpu.memory_space<vmem>>, vector<8x12xf32>
    %c0_1 = arith.constant 0 : index
    %c0_2 = arith.constant 0 : index
    %1 = vector.load %arg10[%c0_1, %c0_2] : memref<8x16xf32, #tpu.memory_space<vmem>>, vector<8x12xf32>
    tpu.vector_store %arg10[%c0_1, %c0_2], %0 {strides = array<i32>} : memref<8x16xf32, #tpu.memory_space<vmem>>, vector<8x12xf32>,
    %c0_3 = arith.constant 0 : index
    %c0_4 = arith.constant 0 : index
    %2 = vector.load %arg2[%c0_3, %c0_4] : memref<8x4xf32, #tpu.memory_space<vmem>>, vector<8x4xf32>
    %c0_5 = arith.constant 0 : index
    %c12 = arith.constant 12 : index
    %3 = vector.load %arg10[%c0_5, %c12] : memref<8x16xf32, #tpu.memory_space<vmem>>, vector<8x4xf32>
    tpu.vector_store %arg10[%c0_5, %c12], %2 {strides = array<i32>} : memref<8x16xf32, #tpu.memory_space<vmem>>, vector<8x4xf32>,
    %c0_6 = arith.constant 0 : index
    %c0_7 = arith.constant 0 : index
    %4 = vector.load %arg10[%c0_6, %c0_7] : memref<8x16xf32, #tpu.memory_space<vmem>>, vector<8x16xf32>
    %5 = arith.truncf %4 : vector<8x16xf32> to vector<8x16xbf16>
    %c0_8 = arith.constant 0 : index
    %c0_9 = arith.constant 0 : index
    %6 = vector.load %arg3[%c0_8, %c0_9] : memref<16x256xbf16, #tpu.memory_space<vmem>>, vector<16x256xbf16>
    %cst = arith.constant dense<0.000000e+00> : vector<8x256xf32>
    %7 = tpu.matmul %5, %6, %cst {dimension_numbers = #tpu.dot_dimension_numbers<[1], [0], [0], [1], [0, 0, 1, 1], [], []>} : vector<8x16xbf16>, vector<16x256xbf16>, vector<8x256xf32> -> vector<8x256xf32>
    %c0_10 = arith.constant 0 : index
    %c0_11 = arith.constant 0 : index
    %8 = vector.load %arg4[%c0_10, %c0_11] : memref<1x256xf32, #tpu.memory_space<vmem>>, vector<1x256xf32>
    %9 = vector.broadcast %8 : vector<1x256xf32> to vector<8x256xf32>
    %10 = arith.addf %7, %9 : vector<8x256xf32>
    %cst_12 = arith.constant 0.000000e+00 : f32
    %11 = vector.broadcast %cst_12 : f32 to vector<8x256xf32>
    %12 = arith.maximumf %10, %11 : vector<8x256xf32>
    %13 = arith.truncf %12 : vector<8x256xf32> to vector<8x256xbf16>
    %c0_13 = arith.constant 0 : index
    %c0_14 = arith.constant 0 : index
    %14 = vector.load %arg5[%c0_13, %c0_14] : memref<256x256xbf16, #tpu.memory_space<vmem>>, vector<256x256xbf16>
    %cst_15 = arith.constant dense<0.000000e+00> : vector<8x256xf32>
    %15 = tpu.matmul %13, %14, %cst_15 {dimension_numbers = #tpu.dot_dimension_numbers<[1], [0], [0], [1], [0, 0, 1, 1], [], []>} : vector<8x256xbf16>, vector<256x256xbf16>, vector<8x256xf32> -> vector<8x256xf32>
    %c0_16 = arith.constant 0 : index
    %c0_17 = arith.constant 0 : index
    %16 = vector.load %arg6[%c0_16, %c0_17] : memref<1x256xf32, #tpu.memory_space<vmem>>, vector<1x256xf32>
    %17 = vector.broadcast %16 : vector<1x256xf32> to vector<8x256xf32>
    %18 = arith.addf %15, %17 : vector<8x256xf32>
    %cst_18 = arith.constant 0.000000e+00 : f32
    %19 = vector.broadcast %cst_18 : f32 to vector<8x256xf32>
    %20 = arith.maximumf %18, %19 : vector<8x256xf32>
    %21 = arith.truncf %20 : vector<8x256xf32> to vector<8x256xbf16>
    %c0_19 = arith.constant 0 : index
    %c0_20 = arith.constant 0 : index
    %22 = vector.load %arg7[%c0_19, %c0_20] : memref<256x128xbf16, #tpu.memory_space<vmem>>, vector<256x128xbf16>
    %cst_21 = arith.constant dense<0.000000e+00> : vector<8x128xf32>
    %23 = tpu.matmul %21, %22, %cst_21 {dimension_numbers = #tpu.dot_dimension_numbers<[1], [0], [0], [1], [0, 0, 1, 1], [], []>} : vector<8x256xbf16>, vector<256x128xbf16>, vector<8x128xf32> -> vector<8x128xf32>
    %24 = vector.extract_strided_slice %23 {offsets = [0, 0], sizes = [8, 1], strides = [1, 1]} : vector<8x128xf32> to vector<8x1xf32>
    %c0_22 = arith.constant 0 : index
    %25 = memref.load %arg8[%c0_22] : memref<1xf32, #tpu.memory_space<smem>>
    %26 = vector.broadcast %25 : f32 to vector<8x1xf32>
    %27 = arith.addf %24, %26 : vector<8x1xf32>
    %c0_23 = arith.constant 0 : index
    %c0_24 = arith.constant 0 : index
    %28 = vector.load %arg9[%c0_23, %c0_24] : memref<8x1xf32, #tpu.memory_space<vmem>>, vector<8x1xf32>
    tpu.vector_store %arg9[%c0_23, %c0_24], %27 {strides = array<i32>} : memref<8x1xf32, #tpu.memory_space<vmem>>, vector<8x1xf32>,
    return
  }
  func.func @transform_0(%arg0: i32) -> (i32, i32) {
    %c0_i32 = arith.constant 0 : i32
    %c0_i32_0 = arith.constant 0 : i32
    return %arg0, %c0_i32 : i32, i32
  }
  func.func @transform_1(%arg0: i32) -> (i32, i32) {
    %c0_i32 = arith.constant 0 : i32
    %c0_i32_0 = arith.constant 0 : i32
    return %arg0, %c0_i32 : i32, i32
  }
  func.func @transform_2(%arg0: i32) -> (i32, i32) {
    %c0_i32 = arith.constant 0 : i32
    %c0_i32_0 = arith.constant 0 : i32
    %c0_i32_1 = arith.constant 0 : i32
    return %c0_i32, %c0_i32_0 : i32, i32
  }
  func.func @transform_3(%arg0: i32) -> (i32, i32) {
    %c0_i32 = arith.constant 0 : i32
    %c0_i32_0 = arith.constant 0 : i32
    %c0_i32_1 = arith.constant 0 : i32
    return %c0_i32, %c0_i32_0 : i32, i32
  }
  func.func @transform_4(%arg0: i32) -> (i32, i32) {
    %c0_i32 = arith.constant 0 : i32
    %c0_i32_0 = arith.constant 0 : i32
    %c0_i32_1 = arith.constant 0 : i32
    return %c0_i32, %c0_i32_0 : i32, i32
  }
  func.func @transform_5(%arg0: i32) -> (i32, i32) {
    %c0_i32 = arith.constant 0 : i32
    %c0_i32_0 = arith.constant 0 : i32
    %c0_i32_1 = arith.constant 0 : i32
    return %c0_i32, %c0_i32_0 : i32, i32
  }
  func.func @transform_6(%arg0: i32) -> (i32, i32) {
    %c0_i32 = arith.constant 0 : i32
    %c0_i32_0 = arith.constant 0 : i32
    %c0_i32_1 = arith.constant 0 : i32
    return %c0_i32, %c0_i32_0 : i32, i32
  }
  func.func @transform_7(%arg0: i32) -> i32 {
    %c0_i32 = arith.constant 0 : i32
    %c0_i32_0 = arith.constant 0 : i32
    return %c0_i32 : i32
  }
  func.func @transform_8(%arg0: i32) -> (i32, i32) {
    %c0_i32 = arith.constant 0 : i32
    %c0_i32_0 = arith.constant 0 : i32
    return %arg0, %c0_i32 : i32, i32
  }
}

</mosaic_0001>

<bundles_post_ra>
// kernel: _lambda_.1
= control target key start
LH: loop header
LB: loop body
LE: loop exit
PB: predicated region body
PF: predicated region fallthrough
CT: control target
= control target key end

     0   :  { %vm32_vm0 = vcmask 97280   ;;  %v684_v2 = vmov 0   ;;  %s685_s9 = smov 12   ;;  %vm39_vm1 = vcmask 130144   ;;  %vm67_vm2 = vcmask 130048   ;;  %s899_s1 = inlined_call_operand.vmem [shape: f32[8,4], index: 1, kind: input, shape index: {}]   ;;  %s900_s0 = inlined_call_operand.vmem [shape: f32[8,12], index: 0, kind: input, shape index: {}]   ;;  %s901_s2 = inlined_call_operand.vmem [shape: bf16[16,256], index: 2, kind: input, shape index: {}]   ;;  %s902_s4 = inlined_call_operand.vmem [shape: bf16[256,256], index: 4, kind: input, shape index: {}]   ;;  %s903_s6 = inlined_call_operand.vmem [shape: bf16[256,128], index: 6, kind: input, shape index: {}]   ;;  %s904_s3 = inlined_call_operand.vmem [shape: f32[1,256], index: 3, kind: input, shape index: {}]   ;;  %s905_s5 = inlined_call_operand.vmem [shape: f32[1,256], index: 5, kind: input, shape index: {}]   ;;  %s906_s7 = inlined_call_operand.<no memory space> [shape: f32[1], index: 7, kind: input, shape index: {}]   ;;  %s907_s8 = inlined_call_operand.vmem [shape: f32[8,1], index: 8, kind: output, shape index: {}]  }
   0x1   :  { %v34_v0 = vld [vmem:[%s899_s1] sm:$0xff]  ;;  %103 = vmatprep.mubr.bf16.mxu0 %v684_v2  ;;  %v623_v7 = vld [vmem:[%s902_s4 + $0x14] ss:$8 sps:$4 sm:$0xff]   ;;  %v625_v8 = vld [vmem:[%s902_s4 + $0x10] ss:$8 sps:$4 sm:$0xff]   ;;  %v47_v52 = vlaneseq  ;;  %vm536_vm3 = vcmask 7168  }
   0x2   :  { %v31_v1 = vld [vmem:[%s900_s0] sm:$0xff]  ;;  %36 = vrot.lane.b32.xlu0 %v34_v0, %s685_s9  ;;  %v629_v11 = vld [vmem:[%s902_s4 + $0x34] ss:$8 sps:$4 sm:$0xff]   ;;  %v631_v12 = vld [vmem:[%s902_s4 + $0x30] ss:$8 sps:$4 sm:$0xff]  }
   0x3   :  { %33 = vst.msk [vmem:[#allocation2] sm:$0xff] %vm32_vm0, %v31_v1  ;;  %v617_v3 = vld [vmem:[%s901_s2 + $0x4] ss:$8 sps:$4 sm:$0xff]   ;;  %v619_v4 = vld [vmem:[%s901_s2] ss:$8 sps:$4 sm:$0xff]   ;;  %v672_v44 = vld [vmem:[%s903_s6 + $0x50] sm:$0xff]  }
   0x4   :  { %v620_v5 = vld [vmem:[%s902_s4 + $0x4] ss:$8 sps:$4 sm:$0xff]   ;;  %71 = vmatprep.subr.bf16.mxu0 %v617_v3  ;;  %v622_v6 = vld [vmem:[%s902_s4] ss:$8 sps:$4 sm:$0xff]   ;;  %v635_v15 = vld [vmem:[%s902_s4 + $0x54] ss:$8 sps:$4 sm:$0xff]  }
   0x5   :  { %72 = vmatpush1.bf16.msra.mxu0 %v619_v4  ;;  %320 = vmatprep.subr.bf16.mxu1 %v620_v5  ;;  %v626_v9 = vld [vmem:[%s902_s4 + $0x24] ss:$8 sps:$4 sm:$0xff]   ;;  %v628_v10 = vld [vmem:[%s902_s4 + $0x20] ss:$8 sps:$4 sm:$0xff]   ;;  %v637_v16 = vld [vmem:[%s902_s4 + $0x50] ss:$8 sps:$4 sm:$0xff]  }
   0x6   :  { %321 = vmatpush1.bf16.msra.mxu1 %v622_v6  ;;  %v632_v13 = vld [vmem:[%s902_s4 + $0x44] ss:$8 sps:$4 sm:$0xff]   ;;  %v634_v14 = vld [vmem:[%s902_s4 + $0x40] ss:$8 sps:$4 sm:$0xff]   ;;  %v641_v19 = vld [vmem:[%s902_s4 + $0x74] ss:$8 sps:$4 sm:$0xff]  }
   0x7   :  { %322 = vmatprep.subr.bf16.mxu1 %v623_v7  ;;  %v638_v17 = vld [vmem:[%s902_s4 + $0x64] ss:$8 sps:$4 sm:$0xff]   ;;  %v640_v18 = vld [vmem:[%s902_s4 + $0x60] ss:$8 sps:$4 sm:$0xff]   ;;  %v643_v20 = vld [vmem:[%s902_s4 + $0x70] ss:$8 sps:$4 sm:$0xff]  }
   0x8   :  { %v644_v21 = vld [vmem:[%s902_s4 + $0x84] ss:$8 sps:$4 sm:$0xff]   ;;  %v646_v22 = vld [vmem:[%s902_s4 + $0x80] ss:$8 sps:$4 sm:$0xff]   ;;  %v647_v23 = vld [vmem:[%s902_s4 + $0x94] ss:$8 sps:$4 sm:$0xff]  }
   0x9   :  { %v649_v24 = vld [vmem:[%s902_s4 + $0x90] ss:$8 sps:$4 sm:$0xff]   ;;  %v650_v25 = vld [vmem:[%s902_s4 + $0xa4] ss:$8 sps:$4 sm:$0xff]   ;;  %v652_v26 = vld [vmem:[%s902_s4 + $0xa0] ss:$8 sps:$4 sm:$0xff]  }
   0xa   :  { %323 = vmatpush1.bf16.msra.mxu1 %v625_v8  ;;  %v653_v27 = vld [vmem:[%s902_s4 + $0xb4] ss:$8 sps:$4 sm:$0xff]   ;;  %v655_v28 = vld [vmem:[%s902_s4 + $0xb0] ss:$8 sps:$4 sm:$0xff]   ;;  %v656_v29 = vld [vmem:[%s902_s4 + $0xc4] ss:$8 sps:$4 sm:$0xff]  }
   0xb   :  { %324 = vmatprep.subr.bf16.mxu1 %v626_v9  ;;  %v658_v30 = vld [vmem:[%s902_s4 + $0xc0] ss:$8 sps:$4 sm:$0xff]   ;;  %v659_v31 = vld [vmem:[%s902_s4 + $0xd4] ss:$8 sps:$4 sm:$0xff]   ;;  %v661_v32 = vld [vmem:[%s902_s4 + $0xd0] ss:$8 sps:$4 sm:$0xff]  }
   0xc   :  { %v662_v36 = vld [vmem:[%s902_s4 + $0xe4] ss:$8 sps:$4 sm:$0xff]   ;;  %v664_v37 = vld [vmem:[%s902_s4 + $0xe0] ss:$8 sps:$4 sm:$0xff]   ;;  %v665_v38 = vld [vmem:[%s902_s4 + $0xf4] ss:$8 sps:$4 sm:$0xff]  }
   0xd   :  { %v667_v39 = vld [vmem:[%s902_s4 + $0xf0] ss:$8 sps:$4 sm:$0xff]   ;;  %v668_v40 = vld [vmem:[%s903_s6 + $0x40] sm:$0xff]   ;;  %v670_v42 = vld [vmem:[%s903_s6 + $0x48] sm:$0xff]   ;;  %v48_v53 = vshrl.u32 %v47_v52, 7 }
   0xe   :  { %325 = vmatpush1.bf16.msra.mxu1 %v628_v10  ;;  %v669_v41 = vld [vmem:[%s903_s6] sm:$0xff]   ;;  %593 = vmatprep.subr.bf16.mxu0 %v668_v40  ;;  %v671_v43 = vld [vmem:[%s903_s6 + $0x8] sm:$0xff]   ;;  %v673_v45 = vld [vmem:[%s903_s6 + $0x10] sm:$0xff]  }
   0xf   :  { %326 = vmatprep.subr.bf16.mxu1 %v629_v11  ;;  %v674_v46 = vld [vmem:[%s903_s6 + $0x58] sm:$0xff]   ;;  %v676_v48 = vld [vmem:[%s903_s6 + $0x60] sm:$0xff]   ;;  %v678_v50 = vld [vmem:[%s903_s6 + $0x68] sm:$0xff]   ;;  %v49_v54 = vsub.s32 0, %v48_v53  ;;  %v53_v56 = vsub.s32 1, %v48_v53 }
  0x10   :  { %v675_v47 = vld [vmem:[%s903_s6 + $0x18] sm:$0xff]   ;;  %v677_v49 = vld [vmem:[%s903_s6 + $0x20] sm:$0xff]   ;;  %v679_v51 = vld [vmem:[%s903_s6 + $0x28] sm:$0xff]  }
  0x11   :  { %v45_v55 = vld [vmem:[%s904_s3] sm:$0x3]  ;;  %v680_v5 = vld [vmem:[%s903_s6 + $0x70] sm:$0xff]   ;;  %v682_v7 = vld [vmem:[%s903_s6 + $0x78] sm:$0xff]  }
  0x12   :  { %327 = vmatpush1.bf16.msra.mxu1 %v631_v12  ;;  %v50_v57 = vrot.slane %v45_v55, %v49_v54  ;;  %v54_v58 = vrot.slane %v45_v55, %v53_v56  ;;  %v681_v6 = vld [vmem:[%s903_s6 + $0x30] sm:$0xff]   ;;  %v683_v8 = vld [vmem:[%s903_s6 + $0x38] sm:$0xff]   ;;  %v148_v9 = vld [vmem:[%s905_s5] sm:$0x3] }
  0x13   :  { %328 = vmatprep.subr.bf16.mxu1 %v632_v13  ;;  %v153_v10 = vrot.slane %v148_v9, %v49_v54  ;;  %v157_v11 = vrot.slane %v148_v9, %v53_v56 }
  0x16   :  { %329 = vmatpush1.bf16.msra.mxu1 %v634_v14 }
  0x17   :  { %330 = vmatprep.subr.bf16.mxu1 %v635_v15 }
  0x1a   :  { %331 = vmatpush1.bf16.msra.mxu1 %v637_v16 }
  0x1b   :  { %332 = vmatprep.subr.bf16.mxu1 %v638_v17 }
  0x1e   :  { %333 = vmatpush1.bf16.msra.mxu1 %v640_v18 }
  0x1f   :  { %334 = vmatprep.subr.bf16.mxu1 %v641_v19 }
  0x22   :  { %335 = vmatpush1.bf16.msra.mxu1 %v643_v20 }
  0x23   :  { %336 = vmatprep.subr.bf16.mxu1 %v644_v21 }
  0x26   :  { %337 = vmatpush1.bf16.msra.mxu1 %v646_v22 }
  0x27   :  { %338 = vmatprep.subr.bf16.mxu1 %v647_v23 }
  0x2a   :  { %339 = vmatpush1.bf16.msra.mxu1 %v649_v24  ;;  %v534_v24 = vstv %s906_s7 }
  0x2b   :  { %340 = vmatprep.subr.bf16.mxu1 %v650_v25 }
  0x2e   :  { %341 = vmatpush1.bf16.msra.mxu1 %v652_v26 }
  0x2f   :  { %342 = vmatprep.subr.bf16.mxu1 %v653_v27 }
  0x32   :  { %343 = vmatpush1.bf16.msra.mxu1 %v655_v28 }
  0x33   :  { %344 = vmatprep.subr.bf16.mxu1 %v656_v29 }
  0x36   :  { %345 = vmatpush1.bf16.msra.mxu1 %v658_v30 }
  0x37   :  { %346 = vmatprep.subr.bf16.mxu1 %v659_v31 }
  0x3a   :  { %347 = vmatpush1.bf16.msra.mxu1 %v661_v32 }
  0x3b   :  { %348 = vmatprep.subr.bf16.mxu1 %v662_v36 }
  0x3e   :  { %349 = vmatpush1.bf16.msra.mxu1 %v664_v37 }
  0x3f   :  { %350 = vmatprep.subr.bf16.mxu1 %v665_v38 }
  0x42   :  { %351 = vmatpush1.bf16.msra.mxu1 %v667_v39 }
  0x74   :  { %v37_v33 = vpop.permute.xlu0 %36 }
  0x75   :  { %40 = vst.msk [vmem:[#allocation2] sm:$0xff] %vm39_vm1, %v37_v33 }
  0x7c   :  { %v41_v34 = vld [vmem:[#allocation2] sm:$0xff] }
  0x7d   :  { %v42_v35 = vpack.c.bf16 %v41_v34, %v41_v34 }
  0x7f   :  { %544 = vmatmul.mubr.msk.bf16.vlgmr.msra.gmra.mrb[0].mxu0 %vm67_vm2, %v42_v35 }
  0x80   :  { %594 = vmatpush3.bf16.msra.mxu0 %v669_v41 }
  0x81   :  { %595 = vmatprep.subr.bf16.mxu0 %v670_v42 }
  0x84   :  { %596 = vmatpush3.bf16.msra.mxu0 %v671_v43 }
  0x85   :  { %597 = vmatprep.subr.bf16.mxu0 %v672_v44 }
  0x88   :  { %598 = vmatpush3.bf16.msra.mxu0 %v673_v45 }
  0x89   :  { %599 = vmatprep.subr.bf16.mxu0 %v674_v46 }
  0x8c   :  { %600 = vmatpush3.bf16.msra.mxu0 %v675_v47 }
  0x8d   :  { %601 = vmatprep.subr.bf16.mxu0 %v676_v48 }
  0x90   :  { %602 = vmatpush3.bf16.msra.mxu0 %v677_v49 }
  0x91   :  { %603 = vmatprep.subr.bf16.mxu0 %v678_v50 }
  0x94   :  { %604 = vmatpush3.bf16.msra.mxu0 %v679_v51 }
  0x95   :  { %605 = vmatprep.subr.bf16.mxu0 %v680_v5 }
  0x98   :  { %606 = vmatpush3.bf16.msra.mxu0 %v681_v6 }
  0x99   :  { %607 = vmatprep.subr.bf16.mxu0 %v682_v7 }
  0x9c   :  { %608 = vmatpush3.bf16.msra.mxu0 %v683_v8 }
 0x152   :  { %v105_v59 = vpop.f32.mrb[0].mxu0 }
 0x153   :  { %v106_v60 = vadd.f32 %v105_v59, %v50_v57  ;;  %v107_v61 = vpop.f32.mrb[1].mxu0 }
 0x154   :  { %v108_v62 = vadd.f32 %v107_v61, %v54_v58  ;;  %v109_v63 = vpop.f32.mrb[2].mxu0 }
 0x155   :  { %v112_v0 = vmax.f32 %v106_v60, 0.0  ;;  %v110_v1 = vpop.f32.mrb[3].mxu0 }
 0x156   :  { %v113_v2 = vmax.f32 %v108_v62, 0.0 }
 0x157   :  { %v114_v4 = vpack.c.bf16 %v112_v0, %v112_v0 }
 0x158   :  { %v115_v3 = vpack.c.bf16 %v113_v2, %v113_v2 }
 0x15a   :  { %352 = vmatprep.mubr.bf16.mxu1 %v115_v3 }
 0x15b   :  { %353 = vmatmul.mubr.bf16.vlgmr.msra.gmra.mrb[0].mxu1 %v114_v4 }
 0x22e   :  { %v354_v12 = vpop.f32.mrb[0].mxu1 }
 0x22f   :  { %v355_v13 = vadd.f32 %v354_v12, %v153_v10  ;;  %v356_v14 = vpop.f32.mrb[1].mxu1 }
 0x230   :  { %v357_v15 = vadd.f32 %v356_v14, %v157_v11  ;;  %v358_v16 = vpop.f32.mrb[2].mxu1 }
 0x231   :  { %v361_v17 = vmax.f32 %v355_v13, 0.0  ;;  %v359_v18 = vpop.f32.mrb[3].mxu1 }
 0x232   :  { %v362_v19 = vmax.f32 %v357_v15, 0.0 }
 0x233   :  { %v363_v21 = vpack.c.bf16 %v361_v17, %v361_v17 }
 0x234   :  { %v364_v20 = vpack.c.bf16 %v362_v19, %v362_v19 }
 0x236   :  { %525 = vmatprep.mubr.bf16.mxu0 %v364_v20 }
 0x237   :  { %526 = vmatmul.mubr.bf16.vlgmr.msra.gmra.mrb[4].mxu0 %v363_v21 }
 0x30a   :  { %v609_v22 = vpop.f32.mrb[4].mxu0 }
 0x30b   :  { %v610_v23 = vpop.f32.mrb[5].mxu0 }
 0x30c   :  { %v611_v25 = vadd.f32 %v610_v23, %v609_v22  ;;  %v612_v26 = vpop.f32.mrb[6].mxu0 }
 0x30d   :  { %v613_v27 = vpop.f32.mrb[7].mxu0 }
 0x30e   :  { %v535_v28 = vadd.f32 %v611_v25, %v534_v24 }
 0x310   :  { %537 = vst.msk [vmem:[%s907_s8] sm:$0xff] %vm536_vm3, %v535_v28 }

</bundles_post_ra>
